<compile_context>
chip_gen: v7x
topology: tpu7x:2x2x1
jax: 0.10.0
libtpu: 0.0.40
codegen_flags: <defaults>
</compile_context>

<pallas_src>
import functools

import jax
import jax.numpy as jnp
from jax.experimental import pallas as pl
from jax.experimental.pallas import tpu as pltpu

EPS = 1e-5
NEG_SLOPE = 0.2
LANE = 128
PARAM_BLOCK_ROWS = 16  # bf16 sublane tile height; 5 rows used (even offsets)


def _round_up(x, m):
    return (x + m - 1) // m * m


def _make_kernel(latent, hidden, dpad, off_w2, off_w3, prow):
    H = hidden

    def _bn_lrelu(x, gamma, beta):
        # Training-mode BatchNorm1d (biased variance) with one-pass stats:
        # the two axis-0 reductions are independent (back-to-back XLU issue).
        mean = jnp.mean(x, axis=0, keepdims=True)
        mean_sq = jnp.mean(x * x, axis=0, keepdims=True)
        var = mean_sq - mean * mean
        scale = gamma * jax.lax.rsqrt(var + EPS)      # rsqrt -> EUP slot
        shift = beta - mean * scale
        y = x * scale + shift                         # affine folded: mul+add
        return jnp.maximum(y, NEG_SLOPE * y)          # LeakyReLU (slope < 1)

    def kernel(z_ref, s_ref, out_ref):
        # Static, lane-aligned slices of the single packed bf16 slab (free).
        w1 = s_ref[:latent, 0:H]                      # (latent, H)  bf16
        w2 = s_ref[:H, off_w2:off_w2 + H]             # (H, H)       bf16
        w3 = s_ref[:H, off_w3:off_w3 + dpad]          # (H, dpad)    bf16

        # Parameter rows (even-row offsets within the 16-row param block),
        # up-cast so BN / bias math stays f32.
        g1 = s_ref[prow + 0:prow + 1, :H].astype(jnp.float32)
        be1 = s_ref[prow + 2:prow + 3, :H].astype(jnp.float32)
        g2 = s_ref[prow + 4:prow + 5, :H].astype(jnp.float32)
        be2 = s_ref[prow + 6:prow + 7, :H].astype(jnp.float32)
        b3 = s_ref[prow + 8:prow + 9, :dpad].astype(jnp.float32)

        z = z_ref[...].astype(jnp.bfloat16)

        # Layer 1: Linear (bias cancelled by training-mode BN) -> BN -> LeakyReLU
        h = jnp.dot(z, w1, preferred_element_type=jnp.float32)
        h = _bn_lrelu(h, g1, be1)

        # Layer 2: Linear (bias cancelled) -> BN -> LeakyReLU
        h = jnp.dot(h.astype(jnp.bfloat16), w2, preferred_element_type=jnp.float32)
        h = _bn_lrelu(h, g2, be2)

        # Output Linear — lane-dense (B, dpad) store; padded lanes stay 0.
        out = jnp.dot(h.astype(jnp.bfloat16), w3,
                      preferred_element_type=jnp.float32) + b3
        out_ref[...] = out.astype(out_ref.dtype)

    return kernel


def prepare_params(params):
    """One-time preprocessing (hoisted out of the forward path):
    transpose nn.Linear weights to (in, out), drop b1/b2 (they cancel in
    training-mode BatchNorm), pack everything into ONE lane-dense bf16 slab."""
    w1 = jnp.asarray(params["w1"], jnp.float32).T   # (latent, H)
    w2 = jnp.asarray(params["w2"], jnp.float32).T   # (H, H)
    w3 = jnp.asarray(params["w3"], jnp.float32).T   # (H, D)

    latent, H = w1.shape
    D = w3.shape[1]
    dpad = _round_up(D, LANE)

    # 128-aligned column offsets so in-kernel slices need no lane relayout.
    off_w2 = _round_up(H, LANE)
    off_w3 = off_w2 + _round_up(H, LANE)
    slab_cols = off_w3 + dpad

    # Param rows start at a 16-row-aligned offset below the weight rows.
    prow = _round_up(max(latent, H), PARAM_BLOCK_ROWS)
    slab_rows = prow + PARAM_BLOCK_ROWS

    slab = jnp.zeros((slab_rows, slab_cols), jnp.float32)
    slab = slab.at[:latent, 0:H].set(w1)
    slab = slab.at[:H, off_w2:off_w2 + H].set(w2)
    slab = slab.at[:H, off_w3:off_w3 + D].set(w3)
    slab = slab.at[prow + 0, :H].set(jnp.asarray(params["g1"], jnp.float32))
    slab = slab.at[prow + 2, :H].set(jnp.asarray(params["be1"], jnp.float32))
    slab = slab.at[prow + 4, :H].set(jnp.asarray(params["g2"], jnp.float32))
    slab = slab.at[prow + 6, :H].set(jnp.asarray(params["be2"], jnp.float32))
    slab = slab.at[prow + 8, :D].set(jnp.asarray(params["b3"], jnp.float32))
    # b1/b2 intentionally omitted: bias before training-mode BN cancels.

    slab = slab.astype(jnp.bfloat16)   # MXU-native operands; halves slab DMA

    meta = dict(latent=latent, hidden=H, data=D, dpad=dpad,
                off_w2=off_w2, off_w3=off_w3, prow=prow)
    return slab, meta


@functools.lru_cache(maxsize=None)
def _build_forward(batch, latent, hidden, data, dpad, off_w2, off_w3, prow):
    """Build (once per shape signature) the pallas_call + jitted wrapper."""
    kernel = _make_kernel(latent, hidden, dpad, off_w2, off_w3, prow)
    slab_rows = prow + PARAM_BLOCK_ROWS
    slab_cols = off_w3 + dpad

    cost = pl.CostEstimate(
        flops=int(2 * batch * (latent * hidden + hidden * hidden + hidden * dpad)
                  + 12 * batch * hidden),
        transcendentals=int(2 * hidden),                    # two BN rsqrt rows
        bytes_accessed=int(4 * batch * latent               # z (f32)
                           + 2 * slab_rows * slab_cols      # slab (bf16)
                           + 4 * batch * dpad),             # out (f32)
    )

    vmem = pl.BlockSpec(memory_space=pltpu.VMEM)
    call = pl.pallas_call(
        kernel,
        out_shape=jax.ShapeDtypeStruct((batch, dpad), jnp.float32),
        in_specs=[vmem, vmem],
        out_specs=vmem,
        cost_estimate=cost,
    )

    # TODO(synk): if many independent forwards are issued (scan / per-sample),
    # add a variant with a leading grid axis over calls (z/out BlockSpecs
    # indexed by the grid, slab BlockSpec pinned to (0, 0),
    # dimension_semantics=("parallel",)) to amortize launch + weight DMA and
    # engage v7x's second TensorCore.
    # TODO(synk): a scaled-up decoder (large B) needs a batch-tiled grid with
    # batch-global two-pass BN stats and vmem_limit_bytes sized for v7x 64 MiB.

    @jax.jit
    def fwd(z, slab):
        out_padded = call(z, slab)
        # Slice fused into the same jitted executable (no extra dispatch).
        return out_padded[:, :data]

    return fwd


def dense_decoder_forward(z, slab, meta):
    """z: (B, latent_size) f32.  slab/meta: from prepare_params (call once)."""
    fwd = _build_forward(int(z.shape[0]), meta["latent"], meta["hidden"],
                         meta["data"], meta["dpad"], meta["off_w2"],
                         meta["off_w3"], meta["prow"])
    return fwd(z, slab)


def _reference(z, p):
    # Exact PyTorch-semantics reference (keeps b1/b2, two-pass BN stats, f32).
    def bn(x, g, b):
        m = jnp.mean(x, axis=0, keepdims=True)
        v = jnp.mean((x - m) ** 2, axis=0, keepdims=True)
        return g * (x - m) / jnp.sqrt(v + EPS) + b

    def lrelu(x):
        return jnp.where(x > 0, x, NEG_SLOPE * x)

    h = z @ p["w1"].T + p["b1"]
    h = lrelu(bn(h, p["g1"], p["be1"]))
    h = h @ p["w2"].T + p["b2"]
    h = lrelu(bn(h, p["g2"], p["be2"]))
    return h @ p["w3"].T + p["b3"]


if __name__ == "__main__":
    batch = 8
    latent_size = 8
    hidden_size = 32
    data_size = 16

    key = jax.random.PRNGKey(0)
    keys = jax.random.split(key, 8)

    params = {
        # nn.Linear weights are (out_features, in_features)
        "w1": jax.random.normal(keys[0], (hidden_size, latent_size), jnp.float32) * 0.1,
        "b1": jax.random.normal(keys[1], (hidden_size,), jnp.float32) * 0.1,
        "g1": jnp.ones((hidden_size,), jnp.float32),       # BatchNorm1d weight
        "be1": jnp.zeros((hidden_size,), jnp.float32),     # BatchNorm1d bias
        "w2": jax.random.normal(keys[2], (hidden_size, hidden_size), jnp.float32) * 0.1,
        "b2": jax.random.normal(keys[3], (hidden_size,), jnp.float32) * 0.1,
        "g2": jnp.ones((hidden_size,), jnp.float32),
        "be2": jnp.zeros((hidden_size,), jnp.float32),
        "w3": jax.random.normal(keys[4], (data_size, hidden_size), jnp.float32) * 0.1,
        "b3": jax.random.normal(keys[5], (data_size,), jnp.float32) * 0.1,
    }

    z = jax.random.normal(keys[6], (batch, latent_size), jnp.float32)

    slab, meta = prepare_params(params)          # one-time packing / transpose
    out = dense_decoder_forward(z, slab, meta)
    out = jax.block_until_ready(out)

    # Second call exercises the cached executable path (no re-trace/lower).
    out = jax.block_until_ready(dense_decoder_forward(z, slab, meta))

    ref = _reference(z, params)
    assert out.shape == (batch, data_size)
    # Tolerance relaxed vs rev 2: matmul operands are explicitly bf16 on the
    # MXU (f32 accumulate), per the perf review.
    assert jnp.allclose(out, ref, atol=3e-2, rtol=3e-2), "mismatch vs JAX reference"

    print("KERNEL_OK")
</pallas_src>

<mosaic_0001>
module attributes {stable_mosaic.version = 11 : i64} {
  func.func @kernel(%arg0: memref<8x8xf32, #tpu.memory_space<vmem>>, %arg1: memref<48x384xbf16, #tpu.memory_space<vmem>>, %arg2: memref<8x128xf32, #tpu.memory_space<vmem>>) attributes {dimension_semantics = [], scalar_prefetch = 0 : i64, scratch_operands = 0 : i64, tpu.core_type = #tpu.core_type<tc>} {
    %c0 = arith.constant 0 : index
    %c0_0 = arith.constant 0 : index
    %0 = vector.load %arg1[%c0, %c0_0] : memref<48x384xbf16, #tpu.memory_space<vmem>>, vector<8x32xbf16>
    %c0_1 = arith.constant 0 : index
    %c128 = arith.constant 128 : index
    %1 = vector.load %arg1[%c0_1, %c128] : memref<48x384xbf16, #tpu.memory_space<vmem>>, vector<32x32xbf16>
    %c0_2 = arith.constant 0 : index
    %c256 = arith.constant 256 : index
    %2 = vector.load %arg1[%c0_2, %c256] : memref<48x384xbf16, #tpu.memory_space<vmem>>, vector<32x128xbf16>
    %c32 = arith.constant 32 : index
    %c0_3 = arith.constant 0 : index
    %3 = vector.load %arg1[%c32, %c0_3] : memref<48x384xbf16, #tpu.memory_space<vmem>>, vector<1x32xbf16>
    %4 = arith.extf %3 : vector<1x32xbf16> to vector<1x32xf32>
    %c34 = arith.constant 34 : index
    %c0_4 = arith.constant 0 : index
    %5 = vector.load %arg1[%c34, %c0_4] : memref<48x384xbf16, #tpu.memory_space<vmem>>, vector<1x32xbf16>
    %6 = arith.extf %5 : vector<1x32xbf16> to vector<1x32xf32>
    %c36 = arith.constant 36 : index
    %c0_5 = arith.constant 0 : index
    %7 = vector.load %arg1[%c36, %c0_5] : memref<48x384xbf16, #tpu.memory_space<vmem>>, vector<1x32xbf16>
    %8 = arith.extf %7 : vector<1x32xbf16> to vector<1x32xf32>
    %c38 = arith.constant 38 : index
    %c0_6 = arith.constant 0 : index
    %9 = vector.load %arg1[%c38, %c0_6] : memref<48x384xbf16, #tpu.memory_space<vmem>>, vector<1x32xbf16>
    %10 = arith.extf %9 : vector<1x32xbf16> to vector<1x32xf32>
    %c40 = arith.constant 40 : index
    %c0_7 = arith.constant 0 : index
    %11 = vector.load %arg1[%c40, %c0_7] : memref<48x384xbf16, #tpu.memory_space<vmem>>, vector<1x128xbf16>
    %12 = arith.extf %11 : vector<1x128xbf16> to vector<1x128xf32>
    %c0_8 = arith.constant 0 : index
    %c0_9 = arith.constant 0 : index
    %13 = vector.load %arg0[%c0_8, %c0_9] : memref<8x8xf32, #tpu.memory_space<vmem>>, vector<8x8xf32>
    %14 = arith.truncf %13 : vector<8x8xf32> to vector<8x8xbf16>
    %cst = arith.constant dense<0.000000e+00> : vector<8x32xf32>
    %15 = tpu.matmul %14, %0, %cst {dimension_numbers = #tpu.dot_dimension_numbers<[1], [0], [0], [1], [0, 0, 1, 1], [], []>} : vector<8x8xbf16>, vector<8x32xbf16>, vector<8x32xf32> -> vector<8x32xf32>
    %cst_10 = arith.constant dense<0.000000e+00> : vector<32xf32>
    %16 = vector.multi_reduction <add>, %15, %cst_10 [0] : vector<8x32xf32> to vector<32xf32>
    %17 = vector.shape_cast %16 : vector<32xf32> to vector<1x32xf32>
    %cst_11 = arith.constant 8.000000e+00 : f32
    %18 = vector.broadcast %cst_11 : f32 to vector<1x32xf32>
    %19 = arith.divf %17, %18 : vector<1x32xf32>
    %20 = arith.mulf %15, %15 : vector<8x32xf32>
    %cst_12 = arith.constant dense<0.000000e+00> : vector<32xf32>
    %21 = vector.multi_reduction <add>, %20, %cst_12 [0] : vector<8x32xf32> to vector<32xf32>
    %22 = vector.shape_cast %21 : vector<32xf32> to vector<1x32xf32>
    %cst_13 = arith.constant 8.000000e+00 : f32
    %23 = vector.broadcast %cst_13 : f32 to vector<1x32xf32>
    %24 = arith.divf %22, %23 : vector<1x32xf32>
    %25 = arith.mulf %19, %19 : vector<1x32xf32>
    %26 = arith.subf %24, %25 : vector<1x32xf32>
    %cst_14 = arith.constant 9.99999974E-6 : f32
    %27 = vector.broadcast %cst_14 : f32 to vector<1x32xf32>
    %28 = arith.addf %26, %27 : vector<1x32xf32>
    %29 = math.rsqrt %28 : vector<1x32xf32>
    %30 = arith.mulf %4, %29 : vector<1x32xf32>
    %31 = arith.mulf %19, %30 : vector<1x32xf32>
    %32 = arith.subf %6, %31 : vector<1x32xf32>
    %33 = vector.broadcast %30 : vector<1x32xf32> to vector<8x32xf32>
    %34 = arith.mulf %15, %33 : vector<8x32xf32>
    %35 = vector.broadcast %32 : vector<1x32xf32> to vector<8x32xf32>
    %36 = arith.addf %34, %35 : vector<8x32xf32>
    %cst_15 = arith.constant 2.000000e-01 : f32
    %37 = vector.broadcast %cst_15 : f32 to vector<8x32xf32>
    %38 = arith.mulf %37, %36 : vector<8x32xf32>
    %39 = arith.maximumf %36, %38 : vector<8x32xf32>
    %40 = arith.truncf %39 : vector<8x32xf32> to vector<8x32xbf16>
    %cst_16 = arith.constant dense<0.000000e+00> : vector<8x32xf32>
    %41 = tpu.matmul %40, %1, %cst_16 {dimension_numbers = #tpu.dot_dimension_numbers<[1], [0], [0], [1], [0, 0, 1, 1], [], []>} : vector<8x32xbf16>, vector<32x32xbf16>, vector<8x32xf32> -> vector<8x32xf32>
    %cst_17 = arith.constant dense<0.000000e+00> : vector<32xf32>
    %42 = vector.multi_reduction <add>, %41, %cst_17 [0] : vector<8x32xf32> to vector<32xf32>
    %43 = vector.shape_cast %42 : vector<32xf32> to vector<1x32xf32>
    %cst_18 = arith.constant 8.000000e+00 : f32
    %44 = vector.broadcast %cst_18 : f32 to vector<1x32xf32>
    %45 = arith.divf %43, %44 : vector<1x32xf32>
    %46 = arith.mulf %41, %41 : vector<8x32xf32>
    %cst_19 = arith.constant dense<0.000000e+00> : vector<32xf32>
    %47 = vector.multi_reduction <add>, %46, %cst_19 [0] : vector<8x32xf32> to vector<32xf32>
    %48 = vector.shape_cast %47 : vector<32xf32> to vector<1x32xf32>
    %cst_20 = arith.constant 8.000000e+00 : f32
    %49 = vector.broadcast %cst_20 : f32 to vector<1x32xf32>
    %50 = arith.divf %48, %49 : vector<1x32xf32>
    %51 = arith.mulf %45, %45 : vector<1x32xf32>
    %52 = arith.subf %50, %51 : vector<1x32xf32>
    %cst_21 = arith.constant 9.99999974E-6 : f32
    %53 = vector.broadcast %cst_21 : f32 to vector<1x32xf32>
    %54 = arith.addf %52, %53 : vector<1x32xf32>
    %55 = math.rsqrt %54 : vector<1x32xf32>
    %56 = arith.mulf %8, %55 : vector<1x32xf32>
    %57 = arith.mulf %45, %56 : vector<1x32xf32>
    %58 = arith.subf %10, %57 : vector<1x32xf32>
    %59 = vector.broadcast %56 : vector<1x32xf32> to vector<8x32xf32>
    %60 = arith.mulf %41, %59 : vector<8x32xf32>
    %61 = vector.broadcast %58 : vector<1x32xf32> to vector<8x32xf32>
    %62 = arith.addf %60, %61 : vector<8x32xf32>
    %cst_22 = arith.constant 2.000000e-01 : f32
    %63 = vector.broadcast %cst_22 : f32 to vector<8x32xf32>
    %64 = arith.mulf %63, %62 : vector<8x32xf32>
    %65 = arith.maximumf %62, %64 : vector<8x32xf32>
    %66 = arith.truncf %65 : vector<8x32xf32> to vector<8x32xbf16>
    %cst_23 = arith.constant dense<0.000000e+00> : vector<8x128xf32>
    %67 = tpu.matmul %66, %2, %cst_23 {dimension_numbers = #tpu.dot_dimension_numbers<[1], [0], [0], [1], [0, 0, 1, 1], [], []>} : vector<8x32xbf16>, vector<32x128xbf16>, vector<8x128xf32> -> vector<8x128xf32>
    %68 = vector.broadcast %12 : vector<1x128xf32> to vector<8x128xf32>
    %69 = arith.addf %67, %68 : vector<8x128xf32>
    %c0_24 = arith.constant 0 : index
    %c0_25 = arith.constant 0 : index
    %70 = vector.load %arg2[%c0_24, %c0_25] : memref<8x128xf32, #tpu.memory_space<vmem>>, vector<8x128xf32>
    tpu.vector_store %arg2[%c0_24, %c0_25], %69 {strides = array<i32>} : memref<8x128xf32, #tpu.memory_space<vmem>>, vector<8x128xf32>,
    return
  }
}

</mosaic_0001>

<bundles_post_ra>
// kernel: fwd.1
= control target key start
LH: loop header
LB: loop body
LE: loop exit
PB: predicated region body
PF: predicated region fallthrough
CT: control target
= control target key end

     0   :  { %7 = vsyncpa [#allocation3], 0  ;;  %s534_s0 = inlined_call_operand.hbm [shape: f32[8,8], index: 0, kind: input, shape index: {}]   ;;  %s535_s1 = inlined_call_operand.hbm [shape: bf16[48,384], index: 1, kind: input, shape index: {}]   ;;  %s536_s2 = inlined_call_operand.hbm [shape: f32[8,128], index: 2, kind: output, shape index: {}]  }
   0x1   :  { %8 = vsyncpa [#allocation6], 0 }
   0x2   :  { %9 = vsyncpa [#allocation4], 0  ;;  %s445_s9 = smov [#allocation2]   ;;  %s446_s11 = smov [#allocation5]  }
   0x3   :  { %s16_s10 = sshll.u32 %s445_s9, 4  ;;  %s25_s12 = sshll.u32 %s446_s11, 4  ;;  %s17_s10 = int_to_ptr.vmem [resolvable:$true] %s16_s10  ;;  %s467_s12 = int_to_ptr.vmem [resolvable:$true] %s25_s12 }
   0x4   :  { %s373_s15 = scalar_lea.hbm %s534_s0, 128 }
   0x5   :  { %p374_p0 = scmp.ne.s32.totalorder %s534_s0, %s373_s15  ;;  %p377_p1 = scmp.lt.u32.totalorder %s373_s15, %s534_s0 }
   0x7   :  { %p379_p2 = pnand %p377_p1, %p374_p0 }
   0x9   :  { %382 = shalt.err (!%p379_p2)
}
   0xa   :  { %s383_s20 = scalar_lea.vmem %s17_s10, 128  ;;  %p388_p4 = scmp.lt.s32.totalorder %s17_s10, %s17_s10 }
   0xb   :  { %p384_p3 = scmp.ne.s32.totalorder %s17_s10, %s383_s20  ;;  %p389_p5 = scmp.lt.s32.totalorder %s383_s20, %s383_s20 }
   0xd   :  { %p390_p6 = por %p389_p5, %p388_p4 }
   0xf   :  { %p391_p7 = pnand %p390_p6, %p384_p3 }
  0x11   :  { %394 = shalt.err (!%p391_p7)
}
  0x12   :  { %19 = dma.hbm_to_vmem [thread:$0]  %s534_s0, 128, %s17_s10, [#allocation3]  }
  0x13   :  { %s395_s25 = scalar_lea.hbm %s535_s1, 1152 }
  0x14   :  { %p396_p8 = scmp.ne.s32.totalorder %s535_s1, %s395_s25  ;;  %p399_p9 = scmp.lt.u32.totalorder %s395_s25, %s535_s1 }
  0x16   :  { %p401_p10 = pnand %p399_p9, %p396_p8 }
  0x18   :  { %404 = shalt.err (!%p401_p10)
}
  0x19   :  { %s405_s30 = scalar_lea.vmem %s467_s12, 1152  ;;  %p410_p12 = scmp.lt.s32.totalorder %s467_s12, %s467_s12 }
  0x1a   :  { %p406_p11 = scmp.ne.s32.totalorder %s467_s12, %s405_s30  ;;  %p411_p13 = scmp.lt.s32.totalorder %s405_s30, %s405_s30 }
  0x1c   :  { %p412_p0 = por %p411_p13, %p410_p12 }
  0x1e   :  { %p413_p1 = pnand %p412_p0, %p406_p11 }
  0x20   :  { %416 = shalt.err (!%p413_p1)
}
  0x21   :  { %s447_s0 = smov 192   ;;  %s448_s3 = smov 12  }
  0x22   :  { %31 = dma.hbm_to_vmem [thread:$0]  %s535_s1, 1152, %s467_s12, [#allocation6], %s447_s0, %s447_s0, %s448_s3  }
  0x23   :  { %439 = dma.done.wait [#allocation3], 128  }
  0x24   :  { %440 = vsyncadd [#allocation3], 4294967168 }
  0x25   :  { %441 = dma.done.wait [#allocation6], 1152  }
  0x26   :  { %442 = vsyncadd [#allocation6], 4294966144  ;;  %v449_v0 = vmov 0.0   ;;  %vm450_vm0 = vmmov 0   ;;  %vm64_vm1 = vcmask 1043456   ;;  %v58_v2 = vld [vmem:[#allocation2] sm:$0xff]  ;;  %v137_v31 = vlaneseq }
  0x27   :  { %336 = vmatprep.subr.bf16.mxu0 %v449_v0  ;;  %338 = vmatprep.mubr.msk.bf16.mxu0 %vm450_vm0, %v449_v0  ;;  %v39_v1 = vld [vmem:[#allocation5] sm:$0xf]  ;;  %v59_v4 = vpack.c.bf16 %v58_v2, %v58_v2  ;;  %vm60_vm2 = vcmask 64512   ;;  %v365_v5 = vld [vmem:[#allocation5 + $0x4] ss:$12 sps:$4 sm:$0xff]   ;;  %vm108_vm3 = vcmask 261120  }
  0x28   :  { %342 = vmatprep.subr.bf16.mxu1 %v449_v0  ;;  %346 = vmatprep.mubr.msk.bf16.mxu1 %vm450_vm0, %v449_v0  ;;  %v66_v3 = vsel %vm64_vm1, %v39_v1, 0  ;;  %v366_v6 = vld [vmem:[#allocation5 + $0x1c] ss:$12 sps:$4 sm:$0xff]   ;;  %v48_v32 = vld [vmem:[#allocation5 + $0x30] sm:$0x1]  ;;  %v507_v34 = vshrl.u32 %v137_v31, 7 }
  0x29   :  { %337 = vmatpush3.bf16.msra.mxu0 %v66_v3  ;;  %343 = vmatpush3.bf16.msra.mxu1 %v365_v5  ;;  %v49_v33 = vunpack.c.l.bf16 %v48_v32  ;;  %v50_v36 = vld [vmem:[#allocation5 + $0x30] sm:$0x2]  ;;  %v367_v51 = vld [vmem:[#allocation5 + $0x8] ss:$12 sps:$4 sm:$0xff]   ;;  %v368_v52 = vld [vmem:[#allocation5 + $0x20] ss:$12 sps:$4 sm:$0xff]  }
  0x2a   :  { %350 = vmatprep.subr.bf16.mxu0 %v449_v0  ;;  %344 = vmatprep.subr.bf16.mxu1 %v449_v0  ;;  %v139_v38 = vsub.s32 0, %v507_v34  ;;  %v51_v39 = vunpack.c.l.bf16 %v50_v36  ;;  %v144_v43 = vsub.s32 2, %v507_v34  ;;  %v56_v31 = vld [vmem:[#allocation5 + $0x3c] sm:$0x1]  ;;  %s451_s1 = smov [#allocation7]  }
  0x2b   :  { %v57_v32 = vunpack.c.l.bf16 %v56_v31  ;;  %s311_s6 = sshll.u32 %s451_s1, 4  ;;  %s312_s6 = int_to_ptr.vmem [resolvable:$true] %s311_s6 }
  0x2c   :  { %339 = vmatmul.mubr.msk.bf16.vlgmr.msra.gmra.mrb[0].mxu0 %vm60_vm2, %v59_v4  ;;  %s417_s7 = scalar_lea.vmem %s312_s6, 128  ;;  %p422_p3 = scmp.lt.s32.totalorder %s312_s6, %s312_s6 }
  0x2d   :  { %354 = vmatprep.mubr.msk.bf16.mxu0 %vm450_vm0, %v449_v0  ;;  %345 = vmatpush3.bf16.msra.mxu1 %v366_v6  ;;  %p418_p2 = scmp.ne.s32.totalorder %s312_s6, %s417_s7  ;;  %p423_p4 = scmp.lt.s32.totalorder %s417_s7, %s417_s7 }
  0x2e   :  { %351 = vmatpush3.bf16.msra.mxu0 %v367_v51 }
  0x2f   :  { %352 = vmatprep.subr.bf16.mxu0 %v449_v0  ;;  %p424_p5 = por %p423_p4, %p422_p3 }
  0x31   :  { %p425_p6 = pnand %p424_p5, %p418_p2 }
  0x32   :  { %353 = vmatpush3.bf16.msra.mxu0 %v368_v52 }
  0xff   :  { %v102_v7 = vpop.f32.mrb[0].mxu0 }
 0x100   :  { %v109_v8 = vsel %vm108_vm3, %v102_v7, 0.0  ;;  %v118_v9 = vmul.f32 %v102_v7, %v102_v7  ;;  %v340_v10 = vpop.f32.mrb[1].mxu0 }
 0x101   :  { %v110_v11 = vrot.slane %v109_v8, 4  ;;  %v105_v12 = vpop.f32.mrb[2].mxu0 }
 0x102   :  { %v119_v13 = vsel %vm108_vm3, %v118_v9, 0.0  ;;  %v341_v14 = vpop.f32.mrb[3].mxu0 }
 0x103   :  { %v111_v15 = vadd.f32 %v110_v11, %v109_v8  ;;  %v120_v16 = vrot.slane %v119_v13, 4 }
 0x105   :  { %v112_v17 = vrot.slane %v111_v15, 2  ;;  %v121_v18 = vadd.f32 %v120_v16, %v119_v13  ;;  %v52_v13 = vld [vmem:[#allocation5 + $0x30] sm:$0x4]  ;;  %v54_v16 = vld [vmem:[#allocation5 + $0x30] sm:$0x8] }
 0x106   :  { %v53_v14 = vunpack.c.l.bf16 %v52_v13 }
 0x107   :  { %v113_v19 = vadd.f32 %v112_v17, %v111_v15  ;;  %v122_v20 = vrot.slane %v121_v18, 2 }
 0x109   :  { %v114_v21 = vrot.slane %v113_v19, 1  ;;  %v123_v22 = vadd.f32 %v122_v20, %v121_v18  ;;  %v234_v18 = vsub.s32 4, %v507_v34 }
 0x10b   :  { %v115_v23 = vadd.f32 %v114_v21, %v113_v19  ;;  %v124_v24 = vrot.slane %v123_v22, 1  ;;  %v55_v19 = vunpack.c.l.bf16 %v54_v16 }
 0x10d   :  { %v117_v25 = vmul.f32 0.125, %v115_v23  ;;  %v125_v26 = vadd.f32 %v124_v24, %v123_v22  ;;  %v239_v23 = vsub.s32 6, %v507_v34 }
 0x10f   :  { %v126_v27 = vmul.f32 0.125, %v125_v26  ;;  %v127_v28 = vmul.f32 %v117_v25, %v117_v25 }
 0x111   :  { %v128_v29 = vsub.f32 %v126_v27, %v127_v28 }
 0x113   :  { %v129_v30 = vadd.f32 1e-05, %v128_v29 }
 0x115   :  { %369 = vrsqrt.f32 %v129_v30 }
 0x11f   :  { %v370_v35 = vpop.eup %369 }
 0x120   :  { %v131_v37 = vmul.f32 %v370_v35, %v49_v33  ;;  %v248_v33 = vrot.slane %v57_v32, %v139_v38 }
 0x122   :  { %v132_v40 = vmul.f32 %v131_v37, %v117_v25  ;;  %v140_v42 = vrot.slane %v131_v37, %v139_v38 }
 0x124   :  { %v134_v41 = vrot.slane %v132_v40, 6  ;;  %v141_v45 = vmul.f32 %v140_v42, %v102_v7 }
 0x126   :  { %v136_v44 = vsub.f32 %v51_v39, %v134_v41 }
 0x128   :  { %v145_v46 = vrot.slane %v136_v44, %v144_v43 }
 0x12a   :  { %v146_v47 = vadd.f32 %v145_v46, %v141_v45 }
 0x12c   :  { %v147_v48 = vmul.f32 0.2, %v146_v47 }
 0x12e   :  { %v148_v49 = vmax.f32 %v146_v47, %v147_v48 }
 0x130   :  { %v149_v50 = vpack.c.bf16 %v148_v49, %v148_v49 }
 0x132   :  { %347 = vmatmul.mubr.msk.bf16.vlgmr.msra.gmra.mrb[0].mxu1 %vm108_vm3, %v149_v50 }
 0x205   :  { %v199_v53 = vpop.f32.mrb[0].mxu1 }
 0x206   :  { %v205_v54 = vsel %vm108_vm3, %v199_v53, 0.0  ;;  %v213_v55 = vmul.f32 %v199_v53, %v199_v53  ;;  %v348_v56 = vpop.f32.mrb[1].mxu1 }
 0x207   :  { %v206_v57 = vrot.slane %v205_v54, 4  ;;  %v202_v58 = vpop.f32.mrb[2].mxu1 }
 0x208   :  { %v214_v59 = vsel %vm108_vm3, %v213_v55, 0.0  ;;  %v349_v60 = vpop.f32.mrb[3].mxu1 }
 0x209   :  { %v207_v61 = vadd.f32 %v206_v57, %v205_v54  ;;  %v215_v62 = vrot.slane %v214_v59, 4 }
 0x20b   :  { %v208_v63 = vrot.slane %v207_v61, 2  ;;  %v216_v1 = vadd.f32 %v215_v62, %v214_v59 }
 0x20d   :  { %v209_v2 = vadd.f32 %v208_v63, %v207_v61  ;;  %v217_v3 = vrot.slane %v216_v1, 2 }
 0x20f   :  { %v210_v4 = vrot.slane %v209_v2, 1  ;;  %v218_v0 = vadd.f32 %v217_v3, %v216_v1 }
 0x211   :  { %v211_v5 = vadd.f32 %v210_v4, %v209_v2  ;;  %v219_v6 = vrot.slane %v218_v0, 1 }
 0x213   :  { %v212_v7 = vmul.f32 0.125, %v211_v5  ;;  %v220_v8 = vadd.f32 %v219_v6, %v218_v0 }
 0x215   :  { %v221_v9 = vmul.f32 0.125, %v220_v8  ;;  %v222_v10 = vmul.f32 %v212_v7, %v212_v7 }
 0x217   :  { %v223_v11 = vsub.f32 %v221_v9, %v222_v10 }
 0x219   :  { %v224_v12 = vadd.f32 1e-05, %v223_v11 }
 0x21b   :  { %371 = vrsqrt.f32 %v224_v12 }
 0x225   :  { %v372_v15 = vpop.eup %371 }
 0x226   :  { %v226_v17 = vmul.f32 %v372_v15, %v53_v14 }
 0x228   :  { %v227_v20 = vmul.f32 %v226_v17, %v212_v7  ;;  %v235_v22 = vrot.slane %v226_v17, %v234_v18 }
 0x22a   :  { %v229_v21 = vrot.slane %v227_v20, 6  ;;  %v236_v25 = vmul.f32 %v235_v22, %v199_v53 }
 0x22c   :  { %v231_v24 = vsub.f32 %v55_v19, %v229_v21 }
 0x22e   :  { %v240_v26 = vrot.slane %v231_v24, %v239_v23 }
 0x230   :  { %v241_v27 = vadd.f32 %v240_v26, %v236_v25 }
 0x232   :  { %v242_v28 = vmul.f32 0.2, %v241_v27 }
 0x234   :  { %v243_v29 = vmax.f32 %v241_v27, %v242_v28 }
 0x236   :  { %v244_v30 = vpack.c.bf16 %v243_v29, %v243_v29 }
 0x238   :  { %355 = vmatmul.mubr.msk.bf16.vlgmr.msra.gmra.mrb[4].mxu0 %vm108_vm3, %v244_v30 }
 0x30b   :  { %v298_v35 = vpop.f32.mrb[4].mxu0 }
 0x30c   :  { %v299_v36 = vadd.f32 %v298_v35, %v248_v33  ;;  %v356_v37 = vpop.f32.mrb[5].mxu0 }
 0x30d   :  { %v301_v39 = vpop.f32.mrb[6].mxu0 }
 0x30e   :  { %304 = vst [vmem:[#allocation7] sm:$0xff] %v299_v36  ;;  %v357_v40 = vpop.f32.mrb[7].mxu0 }
 0x30f   :  { %428 = shalt.err (!%p425_p6)
}
 0x310   :  { %s429_s10 = scalar_lea.hbm %s536_s2, 128 }
 0x311   :  { %p430_p7 = scmp.ne.s32.totalorder %s536_s2, %s429_s10  ;;  %p433_p8 = scmp.lt.u32.totalorder %s429_s10, %s536_s2 }
 0x313   :  { %p435_p9 = pnand %p433_p8, %p430_p7 }
 0x315   :  { %438 = shalt.err (!%p435_p9)
}
 0x316   :  { %314 = dma.vmem_to_hbm [thread:$0]  %s312_s6, 128, %s536_s2, [#allocation4]  }
 0x317   :  { %443 = dma.done.wait [#allocation4], 128  }
 0x318   :  { %444 = vsyncadd [#allocation4], 4294967168 }
 0x319   :  { %318 = vsyncpa [#allocation3], 1 }
 0x31a   :  { %319 = vsyncpa [#allocation6], 1 }
 0x31b   :  { %320 = vsyncpa [#allocation4], 1 }

</bundles_post_ra>
